<compile_context>
chip_gen: v5e
topology: v5e:2x2
jax: 0.10.0
libtpu: 0.0.40
codegen_flags: <defaults>
</compile_context>

<pallas_src>
import math
from functools import partial

import numpy as np
import jax
import jax.numpy as jnp
from jax import lax
from jax.experimental import pallas as pl
from jax.experimental.pallas import tpu as pltpu


def _round_up(x, m):
    return ((x + m - 1) // m) * m


# ----------------------------------------------------------------------------
# Pallas kernels
# ----------------------------------------------------------------------------
def _attn_kernel(q_ref, k_ref, v_ref, o_ref):
    # q: (tq, Ep)  queries  (= g^T block)
    # k: (Ep, N)   keys     (= f, padded along E)
    # v: (N, Ep)   values   (= h^T)
    q = q_ref[0]
    k = k_ref[0]
    v = v_ref[0]
    s = jnp.dot(q, k, preferred_element_type=jnp.float32)            # (tq, N)
    m = jnp.max(s, axis=-1, keepdims=True)
    e = jnp.exp(s - m)
    # one reciprocal per row, then a broadcast multiply (cheaper than a full divide)
    p = e * (1.0 / jnp.sum(e, axis=-1, keepdims=True))
    o_ref[0] = jnp.dot(p.astype(jnp.bfloat16), v,
                       preferred_element_type=jnp.float32)            # (tq, Ep)


@jax.jit
def _attn_call(q, k, v):
    B, N, Ep = q.shape
    tq = N if N <= 512 else 256
    grid = (B, N // tq)
    return pl.pallas_call(
        _attn_kernel,
        out_shape=jax.ShapeDtypeStruct((B, N, Ep), jnp.float32),
        grid_spec=pltpu.PrefetchScalarGridSpec(
            num_scalar_prefetch=0, grid=grid,
            in_specs=[pl.BlockSpec((1, tq, Ep), lambda b, i: (b, i, 0)),
                      pl.BlockSpec((1, Ep, N), lambda b, i: (b, 0, 0)),
                      pl.BlockSpec((1, N, Ep), lambda b, i: (b, 0, 0))],
            out_specs=pl.BlockSpec((1, tq, Ep), lambda b, i: (b, i, 0))),
        compiler_params=pltpu.CompilerParams(
            dimension_semantics=("parallel", "parallel"),
            vmem_limit_bytes=48 * 1024 * 1024),
    )(q, k, v)


def pallas_attention(f, g, h):
    """torch:  s = bmm(f^T, g); beta = softmax(s, dim=1); v = bmm(h, beta).

    f, g, h: (B, E, N) float32.  Returns (B, E, N) float32.
    Fused flash-style: the (N, N) score tile stays in VMEM.
    """
    B, E, N = f.shape
    assert N % 8 == 0
    Ep = _round_up(E, 128)
    pad_e = ((0, 0), (0, Ep - E), (0, 0))
    q = jnp.transpose(jnp.pad(g, pad_e), (0, 2, 1)).astype(jnp.bfloat16)   # (B, N, Ep)
    k = jnp.pad(f, pad_e).astype(jnp.bfloat16)                              # (B, Ep, N)
    v = jnp.transpose(jnp.pad(h, pad_e), (0, 2, 1)).astype(jnp.bfloat16)   # (B, N, Ep)
    out = _attn_call(q, k, v)                                               # (B, N, Ep)
    return jnp.transpose(out[:, :, :E], (0, 2, 1))


def _matmul_kernel(a_ref, b_ref, o_ref, acc_ref):
    @pl.when(pl.program_id(2) == 0)
    def _():
        acc_ref[...] = jnp.zeros_like(acc_ref)

    acc_ref[...] += jnp.dot(a_ref[...], b_ref[...],
                            preferred_element_type=jnp.float32)

    @pl.when(pl.program_id(2) == pl.num_programs(2) - 1)
    def _():
        o_ref[...] = acc_ref[...]


def _tile(dim, cap, unit):
    t = min(dim, cap)
    t = max((t // unit) * unit, unit)
    while dim % t:
        t -= unit
    return t


@jax.jit
def _matmul_padded(a_p, b_p):
    Mp, Kp = a_p.shape
    _, Np = b_p.shape
    tm = _tile(Mp, 256, 8)
    tk = _tile(Kp, 2048, 128)
    tn = _tile(Np, 512, 128)
    grid = (Mp // tm, Np // tn, Kp // tk)
    return pl.pallas_call(
        _matmul_kernel,
        out_shape=jax.ShapeDtypeStruct((Mp, Np), jnp.float32),
        grid_spec=pltpu.PrefetchScalarGridSpec(
            num_scalar_prefetch=0, grid=grid,
            in_specs=[pl.BlockSpec((tm, tk), lambda i, j, k: (i, k)),
                      pl.BlockSpec((tk, tn), lambda i, j, k: (k, j))],
            out_specs=pl.BlockSpec((tm, tn), lambda i, j, k: (i, j)),
            scratch_shapes=[pltpu.VMEM((tm, tn), jnp.float32)]),
        compiler_params=pltpu.CompilerParams(
            dimension_semantics=("parallel", "parallel", "arbitrary"),
            vmem_limit_bytes=48 * 1024 * 1024),
    )(a_p, b_p)


def pallas_matmul(a, b):
    """(M, K) @ (K, N) -> (M, N); bf16 operands, f32 MXU accumulation."""
    a = jnp.asarray(a)
    b = jnp.asarray(b)
    M, K = a.shape
    K2, N = b.shape
    assert K == K2
    Mp, Kp, Np = _round_up(M, 8), _round_up(K, 128), _round_up(N, 128)
    a_p = jnp.pad(a.astype(jnp.bfloat16), ((0, Mp - M), (0, Kp - K)))
    b_p = jnp.pad(b.astype(jnp.bfloat16), ((0, Kp - K), (0, Np - N)))
    return _matmul_padded(a_p, b_p)[:M, :N]


def _tanh_kernel(x_ref, o_ref):
    o_ref[...] = jnp.tanh(x_ref[...])


@jax.jit
def pallas_tanh(x):
    shape = x.shape
    n = int(np.prod(shape))
    npad = _round_up(n, 8 * 128)
    xf = jnp.pad(jnp.ravel(x).astype(jnp.float32), (0, npad - n)).reshape(-1, 128)
    y = pl.pallas_call(
        _tanh_kernel,
        out_shape=jax.ShapeDtypeStruct(xf.shape, jnp.float32),
    )(xf)
    return jnp.ravel(y)[:n].reshape(shape)


# ----------------------------------------------------------------------------
# deterministic parameter construction & small helpers (JAX glue)
# ----------------------------------------------------------------------------
class ParamFactory:
    def __init__(self, key):
        self._key = key

    def _next(self):
        self._key, sub = jax.random.split(self._key)
        return sub

    def normal(self, shape, std=1.0):
        return std * jax.random.normal(self._next(), shape, dtype=jnp.float32)

    def uniform(self, shape, lo, hi):
        return jax.random.uniform(self._next(), shape, minval=lo, maxval=hi,
                                  dtype=jnp.float32)


_NOISE_KEY = [jax.random.PRNGKey(12345)]


def _next_noise(shape):
    # TODO(synk): uses JAX RNG; will not bit-match torch.randn noise.
    _NOISE_KEY[0], sub = jax.random.split(_NOISE_KEY[0])
    return jax.random.normal(sub, shape, dtype=jnp.float32)


def prelu(x, a, axis=1):
    shape = [1] * x.ndim
    shape[axis] = a.shape[0]
    return jnp.where(x >= 0, x, jnp.reshape(a, shape) * x)


def im2col(xp, k, Hout, Wout):
    # xp: (B, C, Hp, Wp) already padded.  Returns (B, C*k*k, Hout*Wout).
    B, C = xp.shape[0], xp.shape[1]
    patches = []
    for i in range(k):
        for j in range(k):
            patches.append(xp[:, :, i:i + Hout, j:j + Wout])
    cols = jnp.stack(patches, axis=2)          # (B, C, k*k, Hout, Wout)
    return cols.reshape(B, C * k * k, Hout * Wout)


# ------------------------------- EqualizedWeight / Linear --------------------
def init_eq_weight(pf, shape):
    return {'w': pf.normal(tuple(shape)),
            'c': 1.0 / math.sqrt(float(np.prod(shape[1:])))}


def eq_weight(p):
    return p['w'] * p['c']


def init_eq_linear(pf, in_p, out_p, bias=0.0):
    return {'weight': init_eq_weight(pf, [out_p, in_p]),
            'bias': pf.normal((out_p,)) * bias}


def eq_linear(p, x):
    # tiny GEMM: plain jnp (per perf review, below-threshold GEMMs skip Pallas)
    W = eq_weight(p['weight'])                       # (out, in)
    return x @ W.T + p['bias'][None, :]


# ------------------------------- MappingNetwork ------------------------------
def init_mapping(pf, planes, n_layers):
    return {'layers': [{'lin': init_eq_linear(pf, planes, planes, 0.0),
                        'a': jnp.full((planes,), 0.25, jnp.float32)}
                       for _ in range(n_layers)]}


def mapping_fwd(p, z):
    norm = jnp.sqrt(jnp.sum(z * z, axis=1, keepdims=True))
    z = z / jnp.maximum(norm, 1e-12)
    for layer in p['layers']:
        z = eq_linear(layer['lin'], z)
        z = prelu(z, layer['a'], axis=1)
    return z


@jax.jit
def _to_style(map_p, lin_p, w):
    # fused (jitted once per output width) 2-layer mapping + style linear
    return eq_linear(lin_p, mapping_fwd(map_p, w))


# ------------------------------- Conv2dWeightModulate ------------------------
def init_conv_mod(pf, in_p, out_p, k, demodulate=True):
    return {'weight': init_eq_weight(pf, [out_p, in_p, k, k]),
            'demod': demodulate, 'k': k, 'out': out_p, 'eps': 1e-8}


@partial(jax.jit, static_argnums=(3, 4))
def _conv_mod_core(x, wt, s, k, demod):
    # grouped (per-sample-weight) conv, exactly like the torch groups=b trick;
    # no im2col materialisation -- XLA's native grouped convolution.
    B, Cin, H, W = x.shape
    Cout = wt.shape[0]
    pad = (k - 1) // 2
    w = wt[None] * s[:, None, :, None, None]                      # (B, Cout, Cin, k, k)
    if demod:
        w = w * lax.rsqrt(jnp.sum(w * w, axis=(2, 3, 4), keepdims=True) + 1e-8)
    xg = x.reshape(1, B * Cin, H, W)
    if pad > 0:
        xg = jnp.pad(xg, ((0, 0), (0, 0), (pad, pad), (pad, pad)), mode='edge')
    y = lax.conv_general_dilated(
        xg, w.reshape(B * Cout, Cin, k, k), window_strides=(1, 1), padding='VALID',
        dimension_numbers=('NCHW', 'OIHW', 'NCHW'), feature_group_count=B)
    return y.reshape(B, Cout, H, W)


def conv_mod_fwd(p, x, s):
    wt = eq_weight(p['weight'])                                    # (Cout, Cin, k, k)
    return _conv_mod_core(x, wt, s, p['k'], p['demod'])


# ------------------------------- StyleConv -----------------------------------
def init_styleconv(pf, d, in_p, out_p, k):
    return {'map': init_mapping(pf, d, 2),
            'lin': init_eq_linear(pf, d, in_p, bias=1.0),
            'conv': init_conv_mod(pf, in_p, out_p, k, True),
            'scale_noise': pf.normal((1,)),
            'bias': pf.normal((out_p,))}


def styleconv_fwd(p, x, w):
    B, _, H, W = x.shape
    s = _to_style(p['map'], p['lin'], w)
    x = conv_mod_fwd(p['conv'], x, s)
    noise = _next_noise((B, 1, H, W))
    x = x + p['scale_noise'][None, :, None, None] * noise
    return x + p['bias'][None, :, None, None]


# ------------------------------- SE / Style blocks ---------------------------
def init_seblock(pf, d, in_p, out_p, dd):
    return {'conv1': init_styleconv(pf, d, out_p + dd, in_p, 1),
            'a1': jnp.full((in_p,), 0.25, jnp.float32),
            'conv2': init_styleconv(pf, d, in_p, out_p + dd, 1)}


def seblock_fwd(p, x, w):
    x = jnp.mean(x, axis=(2, 3), keepdims=True)     # avg_pool over full spatial extent
    x = styleconv_fwd(p['conv1'], x, w)
    x = prelu(x, p['a1'])
    x = styleconv_fwd(p['conv2'], x, w)
    return jax.nn.sigmoid(x)


def init_styleblock(pf, d, last_p, in_p, out_p, dd, k):
    return {'conv1': init_styleconv(pf, d, last_p, in_p, 1),
            'a1': jnp.full((in_p,), 0.25, jnp.float32),
            'conv2': init_styleconv(pf, d, in_p, in_p, k),
            'a2': jnp.full((in_p,), 0.25, jnp.float32),
            'conv3': init_styleconv(pf, d, in_p, out_p + dd, k),
            'a3': jnp.full((out_p + dd,), 0.25, jnp.float32)}


def styleblock_fwd(p, x, w):
    x = prelu(styleconv_fwd(p['conv1'], x, w), p['a1'])
    x = prelu(styleconv_fwd(p['conv2'], x, w), p['a2'])
    x = prelu(styleconv_fwd(p['conv3'], x, w), p['a3'])
    return x


def init_sestyle(pf, d, last_p, in_p, out_p, dd, k):
    return {'convs': init_styleblock(pf, d, last_p, in_p, out_p, dd, k),
            'se': init_seblock(pf, d, in_p, out_p, dd)}


def sestyle_fwd(p, x, w):
    x = styleblock_fwd(p['convs'], x, w)
    se = seblock_fwd(p['se'], x, w)
    return x * se


# ------------------------------- SelfAttention (fused Pallas) ----------------
def init_selfatt(pf, d, in_p, emb):
    return {'key': init_styleconv(pf, d, in_p, emb, 1),
            'query': init_styleconv(pf, d, in_p, emb, 1),
            'value': init_styleconv(pf, d, in_p, emb, 1),
            'self_att': init_styleconv(pf, d, emb, in_p, 1),
            'gamma': pf.uniform((1,), 0.04, 0.08)}


def selfatt_fwd(p, x, w):
    B, C, H, W = x.shape
    N = H * W
    f = styleconv_fwd(p['key'], x, w).reshape(B, -1, N)
    g = styleconv_fwd(p['query'], x, w).reshape(B, -1, N)
    h = styleconv_fwd(p['value'], x, w).reshape(B, -1, N)
    v = pallas_attention(f, g, h)                          # fused score/softmax/value
    v = v.reshape(B, -1, H, W)
    o = styleconv_fwd(p['self_att'], v, w)
    return p['gamma'] * o + x


# ------------------------------- ToRGB ---------------------------------------
def init_torgb(pf, d, planes):
    return {'map': init_mapping(pf, d, 2),
            'lin': init_eq_linear(pf, d, planes, bias=1.0),
            'att': init_selfatt(pf, d, planes, planes),
            'conv': init_conv_mod(pf, planes, 3, 1, demodulate=False),
            'bias': pf.normal((3,)),
            'a': jnp.full((3,), 0.25, jnp.float32)}


def torgb_fwd(p, x, w):
    s = _to_style(p['map'], p['lin'], w)
    x = selfatt_fwd(p['att'], x, w)
    x = conv_mod_fwd(p['conv'], x, s)
    return prelu(x + p['bias'][None, :, None, None], p['a'])


# ------------------------------- ResnetInit / BasicBlock / Tree --------------
def init_resnetinit(pf, d, last_p, in_p, out_p, dd, k):
    return {'residual': init_sestyle(pf, d, last_p, in_p, out_p, dd, k),
            'transient': init_sestyle(pf, d, last_p, in_p, out_p, 0, k),
            'residual_across': init_sestyle(pf, d, last_p, in_p, out_p, 0, k),
            'transient_across': init_sestyle(pf, d, last_p, in_p, out_p, dd, k)}


def resnetinit_fwd(p, x, w):
    xr, xt = x
    rr = sestyle_fwd(p['residual'], xr, w)
    rt = sestyle_fwd(p['residual_across'], xr, w)
    tt = sestyle_fwd(p['transient'], xt, w)
    tr = sestyle_fwd(p['transient_across'], xt, w)
    return (rr + tr, rt + tt)


def init_basicblock(pf, d, last_p, in_p, out_p, dd, root, is_unify):
    p = {'root': root, 'is_unify': is_unify, 'out': out_p, 'dd': dd, 'last': last_p}
    if is_unify:
        p['unify'] = init_styleconv(pf, d, last_p, 2 * out_p + dd, 1)
        p['att'] = init_selfatt(pf, d, 2 * out_p + dd, 2 * out_p + dd)
        p['rir'] = init_resnetinit(pf, d, out_p + dd, in_p, out_p, dd, 3)
    else:
        p['att'] = init_selfatt(pf, d, last_p, last_p)
        p['rir'] = init_resnetinit(pf, d, last_p - out_p, in_p, out_p, dd, 3)
    if root:
        p['shortcut'] = init_styleconv(pf, d, last_p, 2 * out_p + dd, 1)
    return p


def bb_out_planes(p):
    if p['is_unify'] or p['root']:
        return 2 * p['out'] + 2 * p['dd']
    return p['last'] + p['dd']


def basicblock_fwd(p, x, w):
    d = p['out']
    if p['is_unify']:
        x = styleconv_fwd(p['unify'], x, w)
    xa = selfatt_fwd(p['att'], x, w)
    x_res = jnp.concatenate([xa[:, :d], xa[:, 2 * d:]], axis=1)
    x_tra = xa[:, d:]
    xr3, xt3 = resnetinit_fwd(p['rir'], (x_res, x_tra), w)
    if p['root']:
        x = styleconv_fwd(p['shortcut'], x, w)
    return jnp.concatenate([x[:, :d] + xr3[:, :d], xt3, x[:, 2 * d:], xr3[:, d:]], axis=1)


def init_tree(pf, d, last_p, in_p, out_p, dd, level, block_num):
    # The Generator only ever instantiates level-1 trees.
    # TODO(synk): level>1 Tree recursion (and its mix_rgb use) is not exercised here.
    assert level == 1 and block_num > 0
    p = {'out': out_p, 'dd': dd, 'block_num': block_num}
    blocks = []
    lp = last_p
    b0 = init_basicblock(pf, d, lp, in_p, out_p, dd, False, lp < 2 * out_p)
    lp = bb_out_planes(b0)
    blocks.append(b0)
    for _ in range(1, block_num):
        bi = init_basicblock(pf, d, lp, in_p, out_p, dd, False, False)
        lp = bb_out_planes(bi)
        blocks.append(bi)
    root_last = 2 * out_p * (block_num - 1) + lp
    p['blocks'] = blocks
    p['root'] = init_basicblock(pf, d, root_last, in_p * block_num, out_p, dd, True, False)
    p['to_rgb'] = init_torgb(pf, d, bb_out_planes(p['root']))
    return p


def tree_out_planes(p):
    return bb_out_planes(p['root'])


def tree_fwd(p, x, w, rgb):
    d = p['out']
    xs = []
    for b in p['blocks']:
        x = basicblock_fwd(b, x, w)
        xs.append(x[:, :2 * d])
    xs.append(x[:, 2 * d:])
    xs = jnp.concatenate(xs, axis=1)
    out = basicblock_fwd(p['root'], xs, w)
    rgb_new = torgb_fwd(p['to_rgb'], out, w)
    return out, rgb_new


# ------------------------------- UpSample / Smooth / bicubic -----------------
def init_upsample(pf, d, planes, out_p, k, stride, padding, use_attention=True):
    p = {'use_att': use_attention, 'stride': stride, 'padding': padding}
    if use_attention:
        p['att'] = init_selfatt(pf, d, planes, planes)
    bound = 1.0 / math.sqrt(planes * k * k)
    p['convT_w'] = pf.uniform((planes, out_p, k, k), -bound, bound)
    p['convT_b'] = pf.uniform((out_p,), -bound, bound)
    p['a'] = jnp.full((1,), 0.25, jnp.float32)
    return p


def conv_transpose2d(x, Wt, bias, stride, padding):
    B, Cin, H, W = x.shape
    _, Cout, k, _ = Wt.shape
    Hd = (H - 1) * stride + 1
    Wd = (W - 1) * stride + 1
    xd = jnp.zeros((B, Cin, Hd, Wd), x.dtype).at[:, :, ::stride, ::stride].set(x)
    pad = k - 1 - padding
    xp = jnp.pad(xd, ((0, 0), (0, 0), (pad, pad), (pad, pad)))
    Hout = Hd + 2 * pad - k + 1
    Wout = Wd + 2 * pad - k + 1
    cols = im2col(xp, k, Hout, Wout)                               # (B, Cin*k*k, Ho*Wo)
    wmat = jnp.flip(Wt, axis=(2, 3)).transpose(1, 0, 2, 3).reshape(Cout, Cin * k * k)
    cols2 = cols.transpose(1, 0, 2).reshape(Cin * k * k, B * Hout * Wout)
    y = pallas_matmul(wmat, cols2).reshape(Cout, B, Hout, Wout).transpose(1, 0, 2, 3)
    return y + bias[None, :, None, None]


def upsample_fwd(p, x, w):
    if p['use_att']:
        x = selfatt_fwd(p['att'], x, w)
    x = conv_transpose2d(x, p['convT_w'], p['convT_b'], p['stride'], p['padding'])
    return prelu(x, p['a'])


def smooth_fwd(x):
    # separable [1,2,1]x[1,2,1]/16 stencil with replicate padding (VPU work,
    # replaces the old padded 1x9 GEMM per the perf review)
    xp = jnp.pad(x, ((0, 0), (0, 0), (1, 1), (1, 1)), mode='edge')
    t = xp[:, :, :-2, :] + 2.0 * xp[:, :, 1:-1, :] + xp[:, :, 2:, :]
    y = t[:, :, :, :-2] + 2.0 * t[:, :, :, 1:-1] + t[:, :, :, 2:]
    return y / 16.0


def _cubic_weight(t, A=-0.75):
    t = abs(t)
    if t <= 1.0:
        return (A + 2.0) * t ** 3 - (A + 3.0) * t ** 2 + 1.0
    if t < 2.0:
        return A * t ** 3 - 5.0 * A * t ** 2 + 8.0 * A * t - 4.0 * A
    return 0.0


_BICUBIC_CACHE = {}


def _bicubic_matrix(n_in):
    if n_in not in _BICUBIC_CACHE:
        n_out = 2 * n_in
        M = np.zeros((n_out, n_in), np.float32)
        for o in range(n_out):
            src = (o + 0.5) / 2.0 - 0.5
            i0 = int(np.floor(src))
            t = src - i0
            for m in range(-1, 3):
                wgt = _cubic_weight(t - m)
                idx = min(max(i0 + m, 0), n_in - 1)
                M[o, idx] += wgt
        _BICUBIC_CACHE[n_in] = jnp.asarray(M)
    return _BICUBIC_CACHE[n_in]


def bicubic_up2(x):
    B, C, H, W = x.shape
    Mh = _bicubic_matrix(H)
    Mw = _bicubic_matrix(W)
    y = jnp.einsum('oh,bchw->bcow', Mh, x)
    y = jnp.einsum('pw,bcow->bcop', Mw, y)
    return y


def upsample_rgb_fwd(x):
    return smooth_fwd(bicubic_up2(x))


# ------------------------------- Generator -----------------------------------
def init_generator(pf, z_dim, planes=32):
    p = {}
    p['mapping'] = init_mapping(pf, z_dim, 8)
    p['up1'] = init_upsample(pf, z_dim, z_dim, planes * 16, 4, 1, 0, use_attention=False)
    p['initial_constant'] = pf.normal((1, planes * 16, 4, 4))
    p['style1'] = init_sestyle(pf, z_dim, planes * 16, planes * 8, planes * 16, 0, 3)
    p['a1'] = jnp.full((planes * 16,), 0.25, jnp.float32)
    p['to_rgb1'] = init_torgb(pf, z_dim, planes * 16)
    p['up2'] = init_upsample(pf, z_dim, planes * 16, planes * 8, 4, 2, 1)
    p['tree1'] = init_tree(pf, z_dim, planes * 8, planes * 2, planes * 4, int(planes * 0.25), 1, 2)
    p['mix_rgb1'] = init_torgb(pf, z_dim, 6)
    p['up3'] = init_upsample(pf, z_dim, tree_out_planes(p['tree1']), planes * 4, 4, 2, 1)
    p['tree2'] = init_tree(pf, z_dim, planes * 4, planes * 1, planes * 2, int(planes * 0.125), 1, 2)
    p['mix_rgb2'] = init_torgb(pf, z_dim, 6)
    p['up4'] = init_upsample(pf, z_dim, tree_out_planes(p['tree2']), planes * 2, 4, 2, 1)
    p['tree3'] = init_tree(pf, z_dim, planes * 2, planes * 1, planes * 1, int(planes * 0.125), 1, 2)
    p['mix_rgb3'] = init_torgb(pf, z_dim, 6)
    p['up5'] = init_upsample(pf, z_dim, tree_out_planes(p['tree3']), planes * 1, 4, 2, 1)
    p['tree4'] = init_tree(pf, z_dim, planes * 1, int(planes * 0.5), int(planes * 0.5),
                           int(planes * 0.125), 1, 2)
    p['mix_rgb4'] = init_torgb(pf, z_dim, 6)
    return p


def generator_fwd(p, x):
    w = mapping_fwd(p['mapping'], jnp.squeeze(x))
    g = jnp.broadcast_to(p['initial_constant'],
                         (x.shape[0],) + p['initial_constant'].shape[1:])
    x = upsample_fwd(p['up1'], x, w)
    x = sestyle_fwd(p['style1'], x + g, w)
    x = prelu(x, p['a1'])
    rgb = torgb_fwd(p['to_rgb1'], x, w)

    x = upsample_fwd(p['up2'], x, w)
    rgb = upsample_rgb_fwd(rgb)
    x, rgb_new = tree_fwd(p['tree1'], x, w, rgb)
    rgb = rgb + torgb_fwd(p['mix_rgb1'], jnp.concatenate([rgb, rgb_new], 1), w)

    x = upsample_fwd(p['up3'], x, w)
    rgb = upsample_rgb_fwd(rgb)
    x, rgb_new = tree_fwd(p['tree2'], x, w, rgb)
    rgb = rgb + torgb_fwd(p['mix_rgb2'], jnp.concatenate([rgb, rgb_new], 1), w)

    x = upsample_fwd(p['up4'], x, w)
    rgb = upsample_rgb_fwd(rgb)
    x, rgb_new = tree_fwd(p['tree3'], x, w, rgb)
    rgb = rgb + torgb_fwd(p['mix_rgb3'], jnp.concatenate([rgb, rgb_new], 1), w)

    x = upsample_fwd(p['up5'], x, w)
    rgb = upsample_rgb_fwd(rgb)
    x, rgb_new = tree_fwd(p['tree4'], x, w, rgb)
    rgb = rgb + torgb_fwd(p['mix_rgb4'], jnp.concatenate([rgb, rgb_new], 1), w)

    return pallas_tanh(rgb)


if __name__ == "__main__":
    z_dim, planes, batch = 16, 8, 2
    pf = ParamFactory(jax.random.PRNGKey(1))
    params = init_generator(pf, z_dim, planes)
    x = jax.random.normal(jax.random.PRNGKey(0), (batch, z_dim, 1, 1), dtype=jnp.float32)
    out = generator_fwd(params, x)
    out = jax.block_until_ready(out)
    assert out.shape == (batch, 3, 64, 64), out.shape
    print("KERNEL_OK")
</pallas_src>

<mosaic_0001>
module attributes {stable_mosaic.version = 11 : i64} {
  func.func @_matmul_kernel(%arg0: i32, %arg1: i32, %arg2: i32, %arg3: memref<128x256xbf16, #tpu.memory_space<vmem>>, %arg4: memref<256x128xbf16, #tpu.memory_space<vmem>>, %arg5: memref<128x128xf32, #tpu.memory_space<vmem>>, %arg6: memref<128x128xf32, #tpu.memory_space<vmem>>) attributes {dimension_semantics = [#tpu.dimension_semantics<parallel>, #tpu.dimension_semantics<parallel>, #tpu.dimension_semantics<arbitrary>], iteration_bounds = array<i64: 1, 1, 1>, scalar_prefetch = 0 : i64, scratch_operands = 1 : i64, tpu.core_type = #tpu.core_type<tc>, window_params = [{transform_indices = @transform_0, window_bounds = array<i64: 128, 256>}, {transform_indices = @transform_1, window_bounds = array<i64: 256, 128>}, {transform_indices = @transform_2, window_bounds = array<i64: 128, 128>}]} {
    %c0_i32 = arith.constant 0 : i32
    %0 = arith.cmpi eq, %arg2, %c0_i32 : i32
    %1 = arith.extui %0 : i1 to i32
    %c0_i32_0 = arith.constant 0 : i32
    %2 = arith.cmpi ne, %1, %c0_i32_0 : i32
    scf.if %2 {
      %cst_10 = arith.constant 0.000000e+00 : f32
      %12 = vector.broadcast %cst_10 : f32 to vector<128x128xf32>
      %c0_11 = arith.constant 0 : index
      %c0_12 = arith.constant 0 : index
      %13 = vector.load %arg6[%c0_11, %c0_12] : memref<128x128xf32, #tpu.memory_space<vmem>>, vector<128x128xf32>
      tpu.vector_store %arg6[%c0_11, %c0_12], %12 {strides = array<i32>} : memref<128x128xf32, #tpu.memory_space<vmem>>, vector<128x128xf32>,
    } else {
    }
    %c0 = arith.constant 0 : index
    %c0_1 = arith.constant 0 : index
    %3 = vector.load %arg6[%c0, %c0_1] : memref<128x128xf32, #tpu.memory_space<vmem>>, vector<128x128xf32>
    %c0_2 = arith.constant 0 : index
    %c0_3 = arith.constant 0 : index
    %4 = vector.load %arg3[%c0_2, %c0_3] : memref<128x256xbf16, #tpu.memory_space<vmem>>, vector<128x256xbf16>
    %c0_4 = arith.constant 0 : index
    %c0_5 = arith.constant 0 : index
    %5 = vector.load %arg4[%c0_4, %c0_5] : memref<256x128xbf16, #tpu.memory_space<vmem>>, vector<256x128xbf16>
    %cst = arith.constant dense<0.000000e+00> : vector<128x128xf32>
    %6 = tpu.matmul %4, %5, %cst {dimension_numbers = #tpu.dot_dimension_numbers<[1], [0], [0], [1], [0, 0, 1, 1], [], []>} : vector<128x256xbf16>, vector<256x128xbf16>, vector<128x128xf32> -> vector<128x128xf32>
    %7 = arith.addf %3, %6 : vector<128x128xf32>
    %c0_6 = arith.constant 0 : index
    %c0_7 = arith.constant 0 : index
    %8 = vector.load %arg6[%c0_6, %c0_7] : memref<128x128xf32, #tpu.memory_space<vmem>>, vector<128x128xf32>
    tpu.vector_store %arg6[%c0_6, %c0_7], %7 {strides = array<i32>} : memref<128x128xf32, #tpu.memory_space<vmem>>, vector<128x128xf32>,
    %c0_i32_8 = arith.constant 0 : i32
    %9 = arith.cmpi eq, %arg2, %c0_i32_8 : i32
    %10 = arith.extui %9 : i1 to i32
    %c0_i32_9 = arith.constant 0 : i32
    %11 = arith.cmpi ne, %10, %c0_i32_9 : i32
    scf.if %11 {
      %c0_10 = arith.constant 0 : index
      %c0_11 = arith.constant 0 : index
      %12 = vector.load %arg6[%c0_10, %c0_11] : memref<128x128xf32, #tpu.memory_space<vmem>>, vector<128x128xf32>
      %c0_12 = arith.constant 0 : index
      %c0_13 = arith.constant 0 : index
      %13 = vector.load %arg5[%c0_12, %c0_13] : memref<128x128xf32, #tpu.memory_space<vmem>>, vector<128x128xf32>
      tpu.vector_store %arg5[%c0_12, %c0_13], %12 {strides = array<i32>} : memref<128x128xf32, #tpu.memory_space<vmem>>, vector<128x128xf32>,
    } else {
    }
    return
  }
  func.func @transform_0(%arg0: i32, %arg1: i32, %arg2: i32) -> (i32, i32) {
    %c0_i32 = arith.constant 0 : i32
    return %arg0, %arg2 : i32, i32
  }
  func.func @transform_1(%arg0: i32, %arg1: i32, %arg2: i32) -> (i32, i32) {
    %c0_i32 = arith.constant 0 : i32
    return %arg2, %arg1 : i32, i32
  }
  func.func @transform_2(%arg0: i32, %arg1: i32, %arg2: i32) -> (i32, i32) {
    %c0_i32 = arith.constant 0 : i32
    return %arg0, %arg1 : i32, i32
  }
}

</mosaic_0001>

<bundles_post_ra>
// kernel: _matmul_padded.1
= control target key start
LH: loop header
LB: loop body
LE: loop exit
PB: predicated region body
PF: predicated region fallthrough
CT: control target
= control target key end

     0   :  { %7 = vsyncpa [#allocation4], 0  ;;  %s787_s0 = inlined_call_operand.hbm [shape: bf16[128,256], index: 0, kind: input, shape index: {}]   ;;  %s788_s1 = inlined_call_operand.hbm [shape: bf16[256,128], index: 1, kind: input, shape index: {}]   ;;  %s789_s2 = inlined_call_operand.hbm [shape: f32[128,128], index: 2, kind: output, shape index: {}]  }
   0x1   :  { %8 = vsyncpa [#allocation7], 0 }
   0x2   :  { %9 = vsyncpa [#allocation5], 0  ;;  %s14_s11 = sshll.u32 %s787_s0, 4  ;;  %s750_s12 = smov [#allocation3]   ;;  %s15_s11 = int_to_ptr.hbm [resolvable:$true] %s14_s11 }
   0x3   :  { %s16_s13 = sshll.u32 %s750_s12, 4  ;;  %s27_s16 = sshll.u32 %s788_s1, 4  ;;  %s17_s13 = int_to_ptr.vmem [resolvable:$true] %s16_s13  ;;  %s28_s16 = int_to_ptr.hbm [resolvable:$true] %s27_s16 }
   0x4   :  { %s751_s17 = smov 128   ;;  %s752_s18 = smov 8  }
   0x5   :  { %22 = dma.hbm_to_vmem [thread:$0]  %s15_s11, 2048, %s17_s13, [#allocation4], %s751_s17, %s751_s17, %s752_s18  }
   0x6   :  { %s753_s19 = smov [#allocation6]   ;;  %s754_s21 = smov 64  }
   0x7   :  { %s29_s20 = sshll.u32 %s753_s19, 4  ;;  %s755_s0 = smov 4   ;;  %s30_s20 = int_to_ptr.vmem [resolvable:$true] %s29_s20 }
   0x8   :  { %35 = dma.hbm_to_vmem [thread:$0]  %s28_s16, 2048, %s30_s20, [#allocation7], %s754_s21, %s754_s21, %s755_s0  }
   0x9   :  { %744 = dma.done.wait [#allocation4], 2048  }
   0xa   :  { %745 = vsyncadd [#allocation4], 4294965248 }
   0xb   :  { %746 = dma.done.wait [#allocation7], 2048  }
   0xc   :  { %747 = vsyncadd [#allocation7], 4294965248  ;;  %v640_v0 = vld [vmem:[#allocation6 + $0x38] sm:$0xff]  ;;  %v639_v2 = vld [vmem:[#allocation6 + $0x30] sm:$0xff]  ;;  %s756_s1 = smov [#allocation8]   ;;  %s475_s25 = sshll.u32 %s789_s2, 4  ;;  %s476_s25 = int_to_ptr.hbm [resolvable:$true] %s475_s25 }
   0xd   :  { %v648_v1 = vld [vmem:[#allocation6 + $0x78] sm:$0xff]  ;;  %304 = vmatpush.bf16.msra.mxu0 %v640_v0  ;;  %649 = vmatpush.bf16.msra.mxu2 %v640_v0  ;;  %v647_v3 = vld [vmem:[#allocation6 + $0x70] sm:$0xff]  ;;  %v638_v4 = vld [vmem:[#allocation6 + $0x28] sm:$0xff]  ;;  %s473_s22 = sshll.u32 %s756_s1, 4  ;;  %s474_s22 = int_to_ptr.vmem [resolvable:$true] %s473_s22 }
   0xe   :  { %353 = vmatpush.bf16.msra.mxu1 %v648_v1  ;;  %657 = vmatpush.bf16.msra.mxu3 %v648_v1  ;;  %v646_v5 = vld [vmem:[#allocation6 + $0x68] sm:$0xff]  ;;  %v637_v6 = vld [vmem:[#allocation6 + $0x20] sm:$0xff]  ;;  %v636_v8 = vld [vmem:[#allocation6 + $0x18] sm:$0xff] }
   0xf   :  { %v645_v7 = vld [vmem:[#allocation6 + $0x60] sm:$0xff]  ;;  %v644_v9 = vld [vmem:[#allocation6 + $0x58] sm:$0xff]  ;;  %v635_v10 = vld [vmem:[#allocation6 + $0x10] sm:$0xff] }
  0x10   :  { %v643_v11 = vld [vmem:[#allocation6 + $0x50] sm:$0xff]  ;;  %v634_v12 = vld [vmem:[#allocation6 + $0x8] sm:$0xff]  ;;  %v633_v14 = vld [vmem:[#allocation6] sm:$0xff] }
  0x11   :  { %305 = vmatpush.bf16.msra.mxu0 %v639_v2  ;;  %650 = vmatpush.bf16.msra.mxu2 %v639_v2  ;;  %v642_v13 = vld [vmem:[#allocation6 + $0x48] sm:$0xff]  ;;  %v641_v15 = vld [vmem:[#allocation6 + $0x40] sm:$0xff]  ;;  %v499_v28 = vld [vmem:[#allocation3 + $0x10] sm:$0xf] }
  0x12   :  { %354 = vmatpush.bf16.msra.mxu1 %v647_v3  ;;  %658 = vmatpush.bf16.msra.mxu3 %v647_v3  ;;  %v491_v16 = vld [vmem:[#allocation3] sm:$0xf]  ;;  %v618_v17 = vld [vmem:[#allocation3 + $0x4] sm:$0xf0]  ;;  %v617_v20 = vld [vmem:[#allocation3 + $0x4] sm:$0xf] }
  0x13   :  { %v523_v18 = vld [vmem:[#allocation3 + $0x40] sm:$0xf]  ;;  %v626_v19 = vld [vmem:[#allocation3 + $0x44] sm:$0xf0]  ;;  %v493_v21 = vld [vmem:[#allocation3 + $0x8] sm:$0xf0]  ;;  %v492_v24 = vor.u32 %v618_v17, %v491_v16 }
  0x14   :  { %v625_v22 = vld [vmem:[#allocation3 + $0x44] sm:$0xf]  ;;  %v525_v23 = vld [vmem:[#allocation3 + $0x48] sm:$0xf0]  ;;  %v524_v25 = vor.u32 %v626_v19, %v523_v18  ;;  %v496_v26 = vor.u32 %v617_v20, %v493_v21  ;;  %v620_v29 = vld [vmem:[#allocation3 + $0x14] sm:$0xf0] }
  0x15   :  { %306 = vmatpush.bf16.msra.mxu0 %v638_v4  ;;  %651 = vmatpush.bf16.msra.mxu2 %v638_v4  ;;  %v528_v27 = vor.u32 %v625_v22, %v525_v23  ;;  %v531_v30 = vld [vmem:[#allocation3 + $0x50] sm:$0xf]  ;;  %v628_v31 = vld [vmem:[#allocation3 + $0x54] sm:$0xf0]  ;;  %v619_v32 = vld [vmem:[#allocation3 + $0x14] sm:$0xf]  ;;  %v500_v36 = vor.u32 %v620_v29, %v499_v28 }
  0x16   :  { %355 = vmatpush.bf16.msra.mxu1 %v646_v5  ;;  %659 = vmatpush.bf16.msra.mxu3 %v646_v5  ;;  %v501_v33 = vld [vmem:[#allocation3 + $0x18] sm:$0xf0]  ;;  %v627_v34 = vld [vmem:[#allocation3 + $0x54] sm:$0xf]  ;;  %v532_v37 = vor.u32 %v628_v31, %v531_v30  ;;  %v507_v40 = vld [vmem:[#allocation3 + $0x20] sm:$0xf] }
  0x17   :  { %v533_v35 = vld [vmem:[#allocation3 + $0x58] sm:$0xf0]  ;;  %v504_v38 = vor.u32 %v619_v32, %v501_v33  ;;  %v622_v41 = vld [vmem:[#allocation3 + $0x24] sm:$0xf0]  ;;  %v539_v42 = vld [vmem:[#allocation3 + $0x60] sm:$0xf] }
  0x18   :  { %v536_v39 = vor.u32 %v627_v34, %v533_v35  ;;  %v630_v43 = vld [vmem:[#allocation3 + $0x64] sm:$0xf0]  ;;  %v621_v44 = vld [vmem:[#allocation3 + $0x24] sm:$0xf]  ;;  %v509_v45 = vld [vmem:[#allocation3 + $0x28] sm:$0xf0]  ;;  %v508_v48 = vor.u32 %v622_v41, %v507_v40 }
  0x19   :  { %307 = vmatpush.bf16.msra.mxu0 %v637_v6  ;;  %652 = vmatpush.bf16.msra.mxu2 %v637_v6  ;;  %v629_v46 = vld [vmem:[#allocation3 + $0x64] sm:$0xf]  ;;  %v541_v47 = vld [vmem:[#allocation3 + $0x68] sm:$0xf0]  ;;  %v540_v49 = vor.u32 %v630_v43, %v539_v42  ;;  %v512_v50 = vor.u32 %v621_v44, %v509_v45  ;;  %v515_v52 = vld [vmem:[#allocation3 + $0x30] sm:$0xf] }
  0x1a   :  { %356 = vmatpush.bf16.msra.mxu1 %v645_v7  ;;  %660 = vmatpush.bf16.msra.mxu3 %v645_v7  ;;  %v544_v51 = vor.u32 %v629_v46, %v541_v47  ;;  %v624_v53 = vld [vmem:[#allocation3 + $0x34] sm:$0xf0]  ;;  %v547_v54 = vld [vmem:[#allocation3 + $0x70] sm:$0xf]  ;;  %v623_v56 = vld [vmem:[#allocation3 + $0x34] sm:$0xf] }
  0x1b   :  { %v632_v55 = vld [vmem:[#allocation3 + $0x74] sm:$0xf0]  ;;  %v517_v57 = vld [vmem:[#allocation3 + $0x38] sm:$0xf0]  ;;  %v631_v58 = vld [vmem:[#allocation3 + $0x74] sm:$0xf]  ;;  %v516_v60 = vor.u32 %v624_v53, %v515_v52 }
  0x1c   :  { %v549_v59 = vld [vmem:[#allocation3 + $0x78] sm:$0xf0]  ;;  %v548_v61 = vor.u32 %v632_v55, %v547_v54  ;;  %v520_v62 = vor.u32 %v623_v56, %v517_v57 }
  0x1d   :  { %308 = vmatpush.bf16.msra.mxu0 %v636_v8  ;;  %653 = vmatpush.bf16.msra.mxu2 %v636_v8  ;;  %v552_v63 = vor.u32 %v631_v58, %v549_v59 }
  0x1e   :  { %357 = vmatpush.bf16.msra.mxu1 %v644_v9  ;;  %661 = vmatpush.bf16.msra.mxu3 %v644_v9 }
  0x21   :  { %309 = vmatpush.bf16.msra.mxu0 %v635_v10  ;;  %654 = vmatpush.bf16.msra.mxu2 %v635_v10 }
  0x22   :  { %358 = vmatpush.bf16.msra.mxu1 %v643_v11  ;;  %662 = vmatpush.bf16.msra.mxu3 %v643_v11 }
  0x25   :  { %310 = vmatpush.bf16.msra.mxu0 %v634_v12  ;;  %655 = vmatpush.bf16.msra.mxu2 %v634_v12 }
  0x26   :  { %359 = vmatpush.bf16.msra.mxu1 %v642_v13  ;;  %663 = vmatpush.bf16.msra.mxu3 %v642_v13 }
  0x29   :  { %311 = vmatpush.bf16.msra.mxu0 %v633_v14  ;;  %656 = vmatpush.bf16.msra.mxu2 %v633_v14 }
  0x2a   :  { %360 = vmatpush.bf16.msra.mxu1 %v641_v15  ;;  %664 = vmatpush.bf16.msra.mxu3 %v641_v15 }
  0x2c   :  { %312 = vmatmul.bf16.vlgmr.msra.gmra.mxu0 %v492_v24  ;;  %332 = vmatmul.bf16.vlgmr.msra.gmra.mxu2 %v524_v25 }
  0x2d   :  { %361 = vmatmul.bf16.vlgmr.msra.gmra.mxu1 %v496_v26  ;;  %381 = vmatmul.bf16.vlgmr.msra.gmra.mxu3 %v528_v27 }
  0x3c   :  { %317 = vmatmul.bf16.gmra.mxu0 %v500_v36  ;;  %337 = vmatmul.bf16.gmra.mxu2 %v532_v37 }
  0x3d   :  { %366 = vmatmul.bf16.gmra.mxu1 %v504_v38  ;;  %386 = vmatmul.bf16.gmra.mxu3 %v536_v39 }
  0x4c   :  { %322 = vmatmul.bf16.gmra.mxu0 %v508_v48  ;;  %342 = vmatmul.bf16.gmra.mxu2 %v540_v49 }
  0x4d   :  { %371 = vmatmul.bf16.gmra.mxu1 %v512_v50  ;;  %391 = vmatmul.bf16.gmra.mxu3 %v544_v51 }
  0x5c   :  { %327 = vmatmul.bf16.gmra.mxu0 %v516_v60  ;;  %347 = vmatmul.bf16.gmra.mxu2 %v548_v61 }
  0x5d   :  { %376 = vmatmul.bf16.gmra.mxu1 %v520_v62  ;;  %396 = vmatmul.bf16.gmra.mxu3 %v552_v63 }
  0xa9   :  { %v313_v0 = vpop.f32.mrf.mxu0 }
  0xaa   :  { %v362_v1 = vpop.f32.mrf.mxu1 }
  0xab   :  { %v363_v2 = vadd.f32 %v362_v1, %v313_v0 }
  0xad   :  { %453 = vst [vmem:[#allocation8] sm:$0xff] %v363_v2 }
  0xaf   :  { %v333_v3 = vpop.f32.mrf.mxu2 }
  0xb0   :  { %v382_v4 = vpop.f32.mrf.mxu3 }
  0xb1   :  { %v383_v5 = vadd.f32 %v382_v4, %v333_v3  ;;  %v315_v6 = vpop.f32.mrf.mxu0 }
  0xb2   :  { %v364_v7 = vpop.f32.mrf.mxu1 }
  0xb3   :  { %461 = vst [vmem:[#allocation8 + $0x40] sm:$0xff] %v383_v5  ;;  %v365_v8 = vadd.f32 %v364_v7, %v315_v6 }
  0xb5   :  { %454 = vst [vmem:[#allocation8 + $0x8] sm:$0xff] %v365_v8 }
  0xb7   :  { %v335_v9 = vpop.f32.mrf.mxu2 }
  0xb8   :  { %v384_v10 = vpop.f32.mrf.mxu3 }
  0xb9   :  { %v385_v11 = vadd.f32 %v384_v10, %v335_v9  ;;  %v318_v12 = vpop.f32.mrf.mxu0 }
  0xba   :  { %v367_v13 = vpop.f32.mrf.mxu1 }
  0xbb   :  { %462 = vst [vmem:[#allocation8 + $0x48] sm:$0xff] %v385_v11  ;;  %v368_v14 = vadd.f32 %v367_v13, %v318_v12 }
  0xbd   :  { %455 = vst [vmem:[#allocation8 + $0x10] sm:$0xff] %v368_v14 }
  0xbf   :  { %v338_v15 = vpop.f32.mrf.mxu2 }
  0xc0   :  { %v387_v16 = vpop.f32.mrf.mxu3 }
  0xc1   :  { %v388_v17 = vadd.f32 %v387_v16, %v338_v15  ;;  %v320_v18 = vpop.f32.mrf.mxu0 }
  0xc2   :  { %v369_v19 = vpop.f32.mrf.mxu1 }
  0xc3   :  { %463 = vst [vmem:[#allocation8 + $0x50] sm:$0xff] %v388_v17  ;;  %v370_v20 = vadd.f32 %v369_v19, %v320_v18 }
  0xc5   :  { %456 = vst [vmem:[#allocation8 + $0x18] sm:$0xff] %v370_v20 }
  0xc7   :  { %v340_v21 = vpop.f32.mrf.mxu2 }
  0xc8   :  { %v389_v22 = vpop.f32.mrf.mxu3 }
  0xc9   :  { %v390_v23 = vadd.f32 %v389_v22, %v340_v21  ;;  %v323_v24 = vpop.f32.mrf.mxu0 }
  0xca   :  { %v372_v25 = vpop.f32.mrf.mxu1 }
  0xcb   :  { %464 = vst [vmem:[#allocation8 + $0x58] sm:$0xff] %v390_v23  ;;  %v373_v26 = vadd.f32 %v372_v25, %v323_v24 }
  0xcd   :  { %457 = vst [vmem:[#allocation8 + $0x20] sm:$0xff] %v373_v26 }
  0xcf   :  { %v343_v27 = vpop.f32.mrf.mxu2 }
  0xd0   :  { %v392_v28 = vpop.f32.mrf.mxu3 }
  0xd1   :  { %v393_v29 = vadd.f32 %v392_v28, %v343_v27  ;;  %v325_v30 = vpop.f32.mrf.mxu0 }
  0xd2   :  { %v374_v31 = vpop.f32.mrf.mxu1 }
  0xd3   :  { %465 = vst [vmem:[#allocation8 + $0x60] sm:$0xff] %v393_v29  ;;  %v375_v32 = vadd.f32 %v374_v31, %v325_v30 }
  0xd5   :  { %458 = vst [vmem:[#allocation8 + $0x28] sm:$0xff] %v375_v32 }
  0xd7   :  { %v345_v33 = vpop.f32.mrf.mxu2 }
  0xd8   :  { %v394_v34 = vpop.f32.mrf.mxu3 }
  0xd9   :  { %v395_v35 = vadd.f32 %v394_v34, %v345_v33  ;;  %v328_v36 = vpop.f32.mrf.mxu0 }
  0xda   :  { %v377_v37 = vpop.f32.mrf.mxu1 }
  0xdb   :  { %466 = vst [vmem:[#allocation8 + $0x68] sm:$0xff] %v395_v35  ;;  %v378_v38 = vadd.f32 %v377_v37, %v328_v36 }
  0xdd   :  { %459 = vst [vmem:[#allocation8 + $0x30] sm:$0xff] %v378_v38 }
  0xdf   :  { %v348_v39 = vpop.f32.mrf.mxu2 }
  0xe0   :  { %v397_v40 = vpop.f32.mrf.mxu3 }
  0xe1   :  { %v398_v41 = vadd.f32 %v397_v40, %v348_v39  ;;  %v330_v42 = vpop.f32.mrf.mxu0 }
  0xe2   :  { %v379_v43 = vpop.f32.mrf.mxu1 }
  0xe3   :  { %467 = vst [vmem:[#allocation8 + $0x70] sm:$0xff] %v398_v41  ;;  %v380_v44 = vadd.f32 %v379_v43, %v330_v42 }
  0xe5   :  { %460 = vst [vmem:[#allocation8 + $0x38] sm:$0xff] %v380_v44 }
  0xe7   :  { %v350_v45 = vpop.f32.mrf.mxu2 }
  0xe8   :  { %v399_v46 = vpop.f32.mrf.mxu3 }
  0xe9   :  { %v400_v47 = vadd.f32 %v399_v46, %v350_v45 }
  0xeb   :  { %468 = vst [vmem:[#allocation8 + $0x78] sm:$0xff] %v400_v47 }
  0xec   :  { %481 = dma.vmem_to_hbm [thread:$0]  %s474_s22, 2048, %s476_s25, [#allocation5], %s751_s17, %s751_s17, %s752_s18  }
  0xed   :  { %748 = dma.done.wait [#allocation5], 2048  }
  0xee   :  { %749 = vsyncadd [#allocation5], 4294965248 }
  0xef   :  { %486 = vsyncpa [#allocation4], 1 }
  0xf0   :  { %487 = vsyncpa [#allocation7], 1 }
  0xf1   :  { %488 = vsyncpa [#allocation5], 1 }

</bundles_post_ra>
